<compile_context>
chip_gen: v5e
topology: v5e:2x2
jax: 0.10.0
libtpu: 0.0.40
codegen_flags: <defaults>
</compile_context>

<pallas_src>
import functools

import jax
import jax.numpy as jnp
from jax.experimental import pallas as pl
from jax.experimental.pallas import tpu as pltpu

PC = 128            # flattened parameter count; PT1 in_features, W2 out_features
HD = 32             # LSTMCell hidden size / PT1 out_features
KF = 3              # pgrads feature columns (3 + grad + relu(beta) = 5 = PT2 in_features)

# Row layout of the single packed static slab S (R_TOTAL, 128)
R_WIN = 0                   # rows [0, PC)        : W_in = PT1.W^T @ W_ih^T (gate-scaled)
R_WHH = PC                  # rows [PC, PC+HD)    : W_hh^T (gate-scaled)
R_W2 = PC + HD              # rows [PC+HD, +HD)   : W2.W^T
R_GBIAS = PC + 2 * HD       # row                  : fused LSTM gate bias (gate-scaled)
R_W2B = R_GBIAS + 1         # row                  : W2 bias
R_BETA = R_GBIAS + 2        # row                  : beta_base
R_TOTAL = R_GBIAS + 3       # 195 rows

# Rows of the carried state/output slab (3, PC): out, h (lanes [0:HD]), c (lanes [0:HD])
S_OUT, S_H, S_C = 0, 1, 2


def _lr_opt_kernel(x_ref, state_ref, w_ref, pt2_ref, out_ref):
    # --- Recurrent gate contribution: independent of the feature chain, so it is
    #     issued first and overlaps with the feature matmul / VPU combine.
    h_row = state_ref[S_H:S_H + 1, :]                              # (1, PC)
    c_row = state_ref[S_C:S_C + 1, :]                              # (1, PC)
    h0 = h_row[:, 0:HD]                                            # (1, HD)
    c0 = c_row[:, 0:HD]                                            # (1, HD)
    gates_hh = jnp.dot(h0, w_ref[R_WHH:R_WHH + HD, :],
                       preferred_element_type=jnp.float32)         # (1, 4*HD)

    # --- Feature matmul at M=4: G = x_dyn @ W_in (PT1 folded into W_ih at pack time).
    g_rows = jnp.dot(x_ref[...], w_ref[R_WIN:R_WIN + PC, :],
                     preferred_element_type=jnp.float32)           # (4, 4*HD)

    # --- PT2-weighted combine of the 4 result rows (pt2_w scalars from SMEM).
    gates = (pt2_ref[0] * g_rows[0:1, :] + pt2_ref[1] * g_rows[1:2, :]
             + pt2_ref[2] * g_rows[2:3, :] + pt2_ref[3] * g_rows[3:4, :]
             + gates_hh + w_ref[R_GBIAS:R_GBIAS + 1, :])           # (1, 4*HD)

    # --- One full-width tanh recovers all four gates: i/f/o columns were pre-scaled
    #     by 0.5 at pack time, so sigmoid(x) = 0.5 + 0.5*tanh(x/2) = 0.5 + 0.5*t.
    #     PyTorch gate order along the 4*HD axis: i, f, g, o.
    t = jnp.tanh(gates)
    i_g = 0.5 + 0.5 * t[:, 0:HD]
    f_g = 0.5 + 0.5 * t[:, HD:2 * HD]
    g_g = t[:, 2 * HD:3 * HD]
    o_g = 0.5 + 0.5 * t[:, 3 * HD:4 * HD]
    c_new = f_g * c0 + i_g * g_g                                   # (1, HD)
    h_new = o_g * jnp.tanh(c_new)                                  # (1, HD)

    # --- W2 + residual beta + relu  ->  self.i   (lane-dense (1, PC) row 0)
    w2_out = (jnp.dot(h_new, w_ref[R_W2:R_W2 + HD, :],
                      preferred_element_type=jnp.float32)
              + w_ref[R_W2B:R_W2B + 1, :])                         # (1, PC)
    beta = w_ref[R_BETA:R_BETA + 1, :]
    out_ref[S_OUT:S_OUT + 1, :] = jnp.maximum(beta + jnp.tanh(w2_out), 0.0)

    # --- Merged LSTM-state writeback into rows 1-2 of the same output slab.
    out_ref[S_H:S_C + 1, :] = jnp.zeros((2, PC), jnp.float32)
    out_ref[S_H:S_H + 1, 0:HD] = h_new
    out_ref[S_C:S_C + 1, 0:HD] = c_new


def pack_params(params):
    """One-time packing / constant folding of all module parameters.

    Pure layout plumbing + pack-time algebra; re-run whenever the meta-optimizer
    updates any module weight or beta_base (otherwise the kernel uses stale params).
    """
    pt1_w = params['pt1_w']                  # (HD, PC)
    pt1_b = params['pt1_b']                  # (HD,)
    pt2_w = params['pt2_w'][0]               # (5,)
    pt2_b = params['pt2_b'][0]               # ()
    w_ih = params['w_ih']                    # (4*HD, HD)
    w_hh = params['w_hh']                    # (4*HD, HD)
    beta = params['beta_base']               # (PC,)
    relu_beta = jnp.maximum(beta, 0.0)

    # Fold PT1 into the LSTM input projection; fold pt1/pt2 biases and the constant
    # relu(beta) feature column into the gate bias (B_k is only consumed by the LSTM).
    w_in = pt1_w.T @ w_ih.T                                          # (PC, 4*HD)
    bk_bias = (jnp.sum(pt2_w) * pt1_b + pt2_b
               + pt2_w[4] * (relu_beta @ pt1_w.T))                   # (HD,)
    gate_bias = bk_bias @ w_ih.T + params['b_ih'] + params['b_hh']   # (4*HD,)

    # Scale i/f/o gate columns by 0.5 so a single tanh over the full gates row yields
    # all four activations in the kernel (g stays a plain tanh).
    col_scale = jnp.concatenate([jnp.full((HD,), 0.5, jnp.float32),
                                 jnp.full((HD,), 0.5, jnp.float32),
                                 jnp.ones((HD,), jnp.float32),
                                 jnp.full((HD,), 0.5, jnp.float32)])
    w_in = w_in * col_scale[None, :]
    w_hh_t = w_hh.T * col_scale[None, :]
    gate_bias = gate_bias * col_scale

    slab = jnp.concatenate(
        [w_in,                                   # rows [0, PC)
         w_hh_t,                                 # rows [PC, PC+HD)
         params['w2_w'].T,                       # rows [PC+HD, PC+2*HD)
         gate_bias[None, :],                     # row R_GBIAS
         params['w2_b'][None, :],                # row R_W2B
         beta[None, :]],                         # row R_BETA
        axis=0).astype(jnp.float32)              # (R_TOTAL, PC)
    return {'S': slab, 'pt2w': pt2_w[:4].astype(jnp.float32)}


def init_state(h0, c0):
    """Pack (h, c) of shape (1, HD) into the (3, PC) carried state/output slab."""
    slab = jnp.zeros((3, PC), jnp.float32)
    slab = slab.at[S_H, 0:HD].set(h0[0])
    slab = slab.at[S_C, 0:HD].set(c0[0])
    return slab


@functools.partial(jax.jit, donate_argnums=(3,))
def generate_lr_optimizer_fwd(pgrads, grad, packed, state):
    """state: (3, PC) slab carrying [out, h, c]. Returns (out (PC,), new_state slab)."""
    # TODO(synk): the (PC,3)->(3,PC) transpose+concat stays in the wrapper (an
    # in-kernel minor-dim transpose is not a reliable Mosaic layout change); with
    # allow_input_fusion XLA folds this producer into the pallas call's input.
    x_dyn = jnp.concatenate([pgrads.T, grad[None, :]], axis=0)       # (KF+1, PC)

    vmem = pl.BlockSpec(memory_space=pltpu.MemorySpace.VMEM)
    smem = pl.BlockSpec(memory_space=pltpu.MemorySpace.SMEM)
    slab = pl.pallas_call(
        _lr_opt_kernel,
        out_shape=jax.ShapeDtypeStruct((3, PC), jnp.float32),
        in_specs=[vmem, vmem, vmem, smem],
        out_specs=vmem,
        input_output_aliases={1: 0},            # recurrent state updated in place
        compiler_params=pltpu.CompilerParams(
            allow_input_fusion=[True, False, False, False]),
        cost_estimate=pl.CostEstimate(flops=150_000, transcendentals=288,
                                      bytes_accessed=106_000),
    )(x_dyn, state, packed['S'], packed['pt2w'])
    return slab[S_OUT], slab


def reference_fwd(pgrads, grad, params, h0, c0):
    """Pure-JAX reference mirroring the PyTorch forward exactly."""
    beta = params['beta_base']
    pre_XI0 = jnp.concatenate(
        [pgrads, grad[:, None], jax.nn.relu(beta)[:, None]], axis=1).T       # (5, PC)
    pre_XI1 = (pre_XI0 @ params['pt1_w'].T + params['pt1_b']).T              # (HD, 5)
    pre_XI2 = (pre_XI1 @ params['pt2_w'].T + params['pt2_b'])[:, 0]          # (HD,)
    b_k = pre_XI2[None, :]
    gates = (b_k @ params['w_ih'].T + params['b_ih']
             + h0 @ params['w_hh'].T + params['b_hh'])
    i_g, f_g, g_g, o_g = jnp.split(gates, 4, axis=1)
    c_new = jax.nn.sigmoid(f_g) * c0 + jax.nn.sigmoid(i_g) * jnp.tanh(g_g)
    h_new = jax.nn.sigmoid(o_g) * jnp.tanh(c_new)
    out = jax.nn.relu(beta + jnp.tanh((h_new @ params['w2_w'].T + params['w2_b'])[0]))
    return out, h_new, c_new


def init_params(key):
    ks = jax.random.split(key, 10)
    s = 0.1
    return {
        'pt1_w': s * jax.random.normal(ks[0], (HD, PC), jnp.float32),      # nn.Linear(PC, HD)
        'pt1_b': s * jax.random.normal(ks[1], (HD,), jnp.float32),
        'pt2_w': s * jax.random.normal(ks[2], (1, 5), jnp.float32),        # nn.Linear(5, 1)
        'pt2_b': s * jax.random.normal(ks[3], (1,), jnp.float32),
        'w_ih':  s * jax.random.normal(ks[4], (4 * HD, HD), jnp.float32),  # nn.LSTMCell(HD, HD)
        'w_hh':  s * jax.random.normal(ks[5], (4 * HD, HD), jnp.float32),
        'b_ih':  s * jax.random.normal(ks[6], (4 * HD,), jnp.float32),
        'b_hh':  s * jax.random.normal(ks[7], (4 * HD,), jnp.float32),
        'w2_w':  s * jax.random.normal(ks[8], (PC, HD), jnp.float32),      # nn.Linear(HD, PC)
        'w2_b':  s * jax.random.normal(ks[9], (PC,), jnp.float32),
        # beta_base: concat of flattened lr_base params (synthetic, deterministic)
        'beta_base': jnp.linspace(-1.0, 1.0, PC, dtype=jnp.float32),
    }


if __name__ == "__main__":
    key = jax.random.PRNGKey(0)
    kp, kx, kg, kh, kc = jax.random.split(key, 5)
    params = init_params(kp)
    packed = pack_params(params)                                   # one-time packing

    pgrads = jax.random.normal(kx, (PC, KF), jnp.float32)
    grad = jax.random.normal(kg, (PC,), jnp.float32)
    h0 = 0.1 * jax.random.normal(kh, (1, HD), jnp.float32)         # self.h1x[0]
    c0 = 0.1 * jax.random.normal(kc, (1, HD), jnp.float32)         # self.c1x[0]
    state = init_state(h0, c0)                                     # (3, PC) carried slab

    out, state_new = generate_lr_optimizer_fwd(pgrads, grad, packed, state)
    jax.block_until_ready((out, state_new))

    ref_out, ref_h, ref_c = reference_fwd(pgrads, grad, params, h0, c0)
    assert out.shape == (PC,)
    assert jnp.allclose(out, ref_out, atol=1e-4, rtol=1e-4)
    assert jnp.allclose(state_new[S_H, 0:HD], ref_h[0], atol=1e-4, rtol=1e-4)
    assert jnp.allclose(state_new[S_C, 0:HD], ref_c[0], atol=1e-4, rtol=1e-4)
    print("KERNEL_OK")
</pallas_src>

<mosaic_0001>
module attributes {stable_mosaic.version = 11 : i64} {
  func.func @_lr_opt_kernel(%arg0: memref<4x128xf32, #tpu.memory_space<vmem>>, %arg1: memref<3x128xf32, #tpu.memory_space<vmem>>, %arg2: memref<195x128xf32, #tpu.memory_space<vmem>>, %arg3: memref<4xf32, #tpu.memory_space<smem>>, %arg4: memref<3x128xf32, #tpu.memory_space<vmem>>) attributes {dimension_semantics = [], scalar_prefetch = 0 : i64, scratch_operands = 0 : i64, tpu.core_type = #tpu.core_type<tc>} {
    %c1 = arith.constant 1 : index
    %c0 = arith.constant 0 : index
    %0 = vector.load %arg1[%c1, %c0] : memref<3x128xf32, #tpu.memory_space<vmem>>, vector<1x128xf32>
    %c2 = arith.constant 2 : index
    %c0_0 = arith.constant 0 : index
    %1 = vector.load %arg1[%c2, %c0_0] : memref<3x128xf32, #tpu.memory_space<vmem>>, vector<1x128xf32>
    %2 = vector.extract_strided_slice %0 {offsets = [0, 0], sizes = [1, 32], strides = [1, 1]} : vector<1x128xf32> to vector<1x32xf32>
    %3 = vector.extract_strided_slice %1 {offsets = [0, 0], sizes = [1, 32], strides = [1, 1]} : vector<1x128xf32> to vector<1x32xf32>
    %c128 = arith.constant 128 : index
    %c0_1 = arith.constant 0 : index
    %4 = vector.load %arg2[%c128, %c0_1] : memref<195x128xf32, #tpu.memory_space<vmem>>, vector<32x128xf32>
    %cst = arith.constant dense<0.000000e+00> : vector<1x128xf32>
    %5 = tpu.matmul %2, %4, %cst {dimension_numbers = #tpu.dot_dimension_numbers<[1], [0], [0], [1], [0, 0, 1, 1], [], []>} : vector<1x32xf32>, vector<32x128xf32>, vector<1x128xf32> -> vector<1x128xf32>
    %c0_2 = arith.constant 0 : index
    %c0_3 = arith.constant 0 : index
    %6 = vector.load %arg0[%c0_2, %c0_3] : memref<4x128xf32, #tpu.memory_space<vmem>>, vector<4x128xf32>
    %c0_4 = arith.constant 0 : index
    %c0_5 = arith.constant 0 : index
    %7 = vector.load %arg2[%c0_4, %c0_5] : memref<195x128xf32, #tpu.memory_space<vmem>>, vector<128x128xf32>
    %cst_6 = arith.constant dense<0.000000e+00> : vector<4x128xf32>
    %8 = tpu.matmul %6, %7, %cst_6 {dimension_numbers = #tpu.dot_dimension_numbers<[1], [0], [0], [1], [0, 0, 1, 1], [], []>} : vector<4x128xf32>, vector<128x128xf32>, vector<4x128xf32> -> vector<4x128xf32>
    %c0_7 = arith.constant 0 : index
    %9 = memref.load %arg3[%c0_7] : memref<4xf32, #tpu.memory_space<smem>>
    %10 = vector.extract_strided_slice %8 {offsets = [0, 0], sizes = [1, 128], strides = [1, 1]} : vector<4x128xf32> to vector<1x128xf32>
    %11 = vector.broadcast %9 : f32 to vector<1x128xf32>
    %12 = arith.mulf %11, %10 : vector<1x128xf32>
    %c1_8 = arith.constant 1 : index
    %13 = memref.load %arg3[%c1_8] : memref<4xf32, #tpu.memory_space<smem>>
    %14 = vector.extract_strided_slice %8 {offsets = [1, 0], sizes = [1, 128], strides = [1, 1]} : vector<4x128xf32> to vector<1x128xf32>
    %15 = vector.broadcast %13 : f32 to vector<1x128xf32>
    %16 = arith.mulf %15, %14 : vector<1x128xf32>
    %17 = arith.addf %12, %16 : vector<1x128xf32>
    %c2_9 = arith.constant 2 : index
    %18 = memref.load %arg3[%c2_9] : memref<4xf32, #tpu.memory_space<smem>>
    %19 = vector.extract_strided_slice %8 {offsets = [2, 0], sizes = [1, 128], strides = [1, 1]} : vector<4x128xf32> to vector<1x128xf32>
    %20 = vector.broadcast %18 : f32 to vector<1x128xf32>
    %21 = arith.mulf %20, %19 : vector<1x128xf32>
    %22 = arith.addf %17, %21 : vector<1x128xf32>
    %c3 = arith.constant 3 : index
    %23 = memref.load %arg3[%c3] : memref<4xf32, #tpu.memory_space<smem>>
    %24 = vector.extract_strided_slice %8 {offsets = [3, 0], sizes = [1, 128], strides = [1, 1]} : vector<4x128xf32> to vector<1x128xf32>
    %25 = vector.broadcast %23 : f32 to vector<1x128xf32>
    %26 = arith.mulf %25, %24 : vector<1x128xf32>
    %27 = arith.addf %22, %26 : vector<1x128xf32>
    %28 = arith.addf %27, %5 : vector<1x128xf32>
    %c192 = arith.constant 192 : index
    %c0_10 = arith.constant 0 : index
    %29 = vector.load %arg2[%c192, %c0_10] : memref<195x128xf32, #tpu.memory_space<vmem>>, vector<1x128xf32>
    %30 = arith.addf %28, %29 : vector<1x128xf32>
    %31 = math.tanh %30 : vector<1x128xf32>
    %32 = vector.extract_strided_slice %31 {offsets = [0, 0], sizes = [1, 32], strides = [1, 1]} : vector<1x128xf32> to vector<1x32xf32>
    %cst_11 = arith.constant 5.000000e-01 : f32
    %33 = vector.broadcast %cst_11 : f32 to vector<1x32xf32>
    %34 = arith.mulf %33, %32 : vector<1x32xf32>
    %cst_12 = arith.constant 5.000000e-01 : f32
    %35 = vector.broadcast %cst_12 : f32 to vector<1x32xf32>
    %36 = arith.addf %35, %34 : vector<1x32xf32>
    %37 = vector.extract_strided_slice %31 {offsets = [0, 32], sizes = [1, 32], strides = [1, 1]} : vector<1x128xf32> to vector<1x32xf32>
    %cst_13 = arith.constant 5.000000e-01 : f32
    %38 = vector.broadcast %cst_13 : f32 to vector<1x32xf32>
    %39 = arith.mulf %38, %37 : vector<1x32xf32>
    %cst_14 = arith.constant 5.000000e-01 : f32
    %40 = vector.broadcast %cst_14 : f32 to vector<1x32xf32>
    %41 = arith.addf %40, %39 : vector<1x32xf32>
    %42 = vector.extract_strided_slice %31 {offsets = [0, 64], sizes = [1, 32], strides = [1, 1]} : vector<1x128xf32> to vector<1x32xf32>
    %43 = vector.extract_strided_slice %31 {offsets = [0, 96], sizes = [1, 32], strides = [1, 1]} : vector<1x128xf32> to vector<1x32xf32>
    %cst_15 = arith.constant 5.000000e-01 : f32
    %44 = vector.broadcast %cst_15 : f32 to vector<1x32xf32>
    %45 = arith.mulf %44, %43 : vector<1x32xf32>
    %cst_16 = arith.constant 5.000000e-01 : f32
    %46 = vector.broadcast %cst_16 : f32 to vector<1x32xf32>
    %47 = arith.addf %46, %45 : vector<1x32xf32>
    %48 = arith.mulf %41, %3 : vector<1x32xf32>
    %49 = arith.mulf %36, %42 : vector<1x32xf32>
    %50 = arith.addf %48, %49 : vector<1x32xf32>
    %51 = math.tanh %50 : vector<1x32xf32>
    %52 = arith.mulf %47, %51 : vector<1x32xf32>
    %c160 = arith.constant 160 : index
    %c0_17 = arith.constant 0 : index
    %53 = vector.load %arg2[%c160, %c0_17] : memref<195x128xf32, #tpu.memory_space<vmem>>, vector<32x128xf32>
    %cst_18 = arith.constant dense<0.000000e+00> : vector<1x128xf32>
    %54 = tpu.matmul %52, %53, %cst_18 {dimension_numbers = #tpu.dot_dimension_numbers<[1], [0], [0], [1], [0, 0, 1, 1], [], []>} : vector<1x32xf32>, vector<32x128xf32>, vector<1x128xf32> -> vector<1x128xf32>
    %c193 = arith.constant 193 : index
    %c0_19 = arith.constant 0 : index
    %55 = vector.load %arg2[%c193, %c0_19] : memref<195x128xf32, #tpu.memory_space<vmem>>, vector<1x128xf32>
    %56 = arith.addf %54, %55 : vector<1x128xf32>
    %c194 = arith.constant 194 : index
    %c0_20 = arith.constant 0 : index
    %57 = vector.load %arg2[%c194, %c0_20] : memref<195x128xf32, #tpu.memory_space<vmem>>, vector<1x128xf32>
    %58 = math.tanh %56 : vector<1x128xf32>
    %59 = arith.addf %57, %58 : vector<1x128xf32>
    %cst_21 = arith.constant 0.000000e+00 : f32
    %60 = vector.broadcast %cst_21 : f32 to vector<1x128xf32>
    %61 = arith.maximumf %59, %60 : vector<1x128xf32>
    %c0_22 = arith.constant 0 : index
    %c0_23 = arith.constant 0 : index
    %62 = vector.load %arg4[%c0_22, %c0_23] : memref<3x128xf32, #tpu.memory_space<vmem>>, vector<1x128xf32>
    tpu.vector_store %arg4[%c0_22, %c0_23], %61 {strides = array<i32>} : memref<3x128xf32, #tpu.memory_space<vmem>>, vector<1x128xf32>,
    %cst_24 = arith.constant 0.000000e+00 : f32
    %63 = vector.broadcast %cst_24 : f32 to vector<2x128xf32>
    %c1_25 = arith.constant 1 : index
    %c0_26 = arith.constant 0 : index
    %64 = vector.load %arg4[%c1_25, %c0_26] : memref<3x128xf32, #tpu.memory_space<vmem>>, vector<2x128xf32>
    tpu.vector_store %arg4[%c1_25, %c0_26], %63 {strides = array<i32>} : memref<3x128xf32, #tpu.memory_space<vmem>>, vector<2x128xf32>,
    %c1_27 = arith.constant 1 : index
    %c0_28 = arith.constant 0 : index
    %65 = vector.load %arg4[%c1_27, %c0_28] : memref<3x128xf32, #tpu.memory_space<vmem>>, vector<1x32xf32>
    tpu.vector_store %arg4[%c1_27, %c0_28], %52 {strides = array<i32>} : memref<3x128xf32, #tpu.memory_space<vmem>>, vector<1x32xf32>,
    %c2_29 = arith.constant 2 : index
    %c0_30 = arith.constant 0 : index
    %66 = vector.load %arg4[%c2_29, %c0_30] : memref<3x128xf32, #tpu.memory_space<vmem>>, vector<1x32xf32>
    tpu.vector_store %arg4[%c2_29, %c0_30], %50 {strides = array<i32>} : memref<3x128xf32, #tpu.memory_space<vmem>>, vector<1x32xf32>,
    return
  }
}

</mosaic_0001>

<bundles_post_ra>
// kernel: generate_lr_optimizer_fwd.2
= control target key start
LH: loop header
LB: loop body
LE: loop exit
PB: predicated region body
PF: predicated region fallthrough
CT: control target
= control target key end

     0   :  { %s468_s0 = inlined_call_operand.vmem [shape: f32[3,128], index: 0, kind: input, shape index: {}, may-alias: {0,6}]   ;;  %s469_s1 = inlined_call_operand.hbm [shape: f32[195,128], index: 1, kind: input, shape index: {}]   ;;  %s470_s2 = inlined_call_operand.vmem [shape: f32[4], index: 2, kind: input, shape index: {}]   ;;  %s471_s3 = inlined_call_operand.hbm [shape: f32[1,128], index: 3, kind: input, shape index: {}]   ;;  %s472_s4 = inlined_call_operand.<no memory space> [shape: f32[], index: 4, kind: input, shape index: {}]   ;;  %s473_s5 = inlined_call_operand.hbm [shape: f32[3,128], index: 5, kind: input, shape index: {}]   ;;  %s474_s6 = inlined_call_operand.vmem [shape: f32[3,128], index: 6, kind: output, shape index: {}, may-alias: {0,6}]  }
   0x1   :  { %v11_v0 = vstv %s472_s4 }
   0x2   :  { %13 = vsyncpa [#allocation13], 0 }
   0x3   :  { %14 = vsyncpa [#allocation16], 0  ;;  %s37_s25 = sshll.u32 %s473_s5, 4  ;;  %s38_s25 = int_to_ptr.hbm [resolvable:$true] %s37_s25 }
   0x4   :  { %15 = vsyncpa [#allocation14], 0  ;;  %s388_s26 = smov [#allocation15]   ;;  %s26_s30 = sshll.u32 %s471_s3, 4  ;;  %s27_s30 = int_to_ptr.hbm [resolvable:$true] %s26_s30 }
   0x5   :  { %s39_s27 = sshll.u32 %s388_s26, 4  ;;  %s389_s7 = smov [#allocation12]   ;;  %s40_s27 = int_to_ptr.vmem [resolvable:$true] %s39_s27 }
   0x6   :  { %42 = dma.hbm_to_vmem [thread:$0]  %s38_s25, 64, %s40_s27, [#allocation16]  }
   0x7   :  { %s28_s8 = sshll.u32 %s389_s7, 4  ;;  %s49_s10 = sshll.u32 %s469_s1, 4  ;;  %s29_s8 = int_to_ptr.vmem [resolvable:$true] %s28_s8  ;;  %s50_s10 = int_to_ptr.hbm [resolvable:$true] %s49_s10 }
   0x8   :  { %31 = dma.hbm_to_vmem [thread:$0]  %s27_s30, 16, %s29_s8, [#allocation13]  }
   0x9   :  { %s390_s5 = smov [#allocation17]   ;;  %s63_s14 = sshll.u32 %s470_s2, 4  ;;  %s64_s14 = int_to_ptr.vmem [resolvable:$true] %s63_s14 }
   0xa   :  { %s51_s11 = sshll.u32 %s390_s5, 4  ;;  %s391_s15 = smov 128   ;;  %s52_s11 = int_to_ptr.vmem [resolvable:$true] %s51_s11 }
   0xb   :  { %s392_s3 = smov 8   ;;  %s393_s16 = smov [#allocation18]  }
   0xc   :  { %57 = dma.hbm_to_vmem [thread:$0]  %s50_s10, 3200, %s52_s11, [#allocation16], %s391_s15, %s391_s15, %s392_s3  }
   0xd   :  { %66 = dma.vmem_to_smem %s64_s14, 16, %s393_s16, [#allocation14]  }
   0xe   :  { %382 = dma.done.wait [#allocation13], 16  }
   0xf   :  { %383 = vsyncadd [#allocation13], 4294967280 }
  0x10   :  { %384 = dma.done.wait [#allocation16], 3264  }
  0x11   :  { %385 = vsyncadd [#allocation16], 4294964032 }
  0x12   :  { %386 = dma.done.wait [#allocation14], 16  }
  0x13   :  { %387 = vsyncadd [#allocation14], 4294967280 }
  0x14   :  { %83 = sfence }
  0x15   :  { %v154_v1 = vld [vmem:[#allocation17 + $0x78] sm:$0xff]  ;;  %v153_v2 = vld [vmem:[#allocation17 + $0x70] sm:$0xff]  ;;  %v87_v3 = vlaneseq  ;;  %v152_v4 = vld [vmem:[#allocation17 + $0x68] sm:$0xff]  ;;  %vm92_vm0 = vcmask 1044480   ;;  %vm114_vm3 = vcmask 261120   ;;  %s278_s17 = sld [smem:[#allocation18 + $0x1]] }
  0x16   :  { %155 = vmatpush.msra.mxu1 %v154_v1  ;;  %v151_v6 = vld [vmem:[#allocation17 + $0x60] sm:$0xff]  ;;  %v86_v8 = vld [vmem:[#allocation12] sm:$0x1]  ;;  %v95_v9 = vld [vmem:[#allocation15] sm:$0x7]  ;;  %s279_s18 = sld [smem:[#allocation18 + $0x2]] }
  0x17   :  { %v88_v5 = vshrl.u32 %v87_v3, 7  ;;  %v150_v10 = vld [vmem:[#allocation17 + $0x58] sm:$0xff]  ;;  %v112_v12 = vld [vmem:[#allocation17 + $0x90] sm:$0xff]  ;;  %v111_v17 = vld [vmem:[#allocation17 + $0x88] sm:$0xff]  ;;  %s175_s21 = sld [smem:[#allocation18]]  ;;  %v394_v34 = vmov 0.0  }
  0x18   :  { %156 = vmatpush.msra.mxu1 %v153_v2  ;;  %v113_v11 = vld [vmem:[#allocation17 + $0x98] sm:$0xff]  ;;  %v149_v14 = vld [vmem:[#allocation17 + $0x50] sm:$0xff]  ;;  %v148_v19 = vld [vmem:[#allocation17 + $0x48] sm:$0xff]  ;;  %s280_s24 = sld [smem:[#allocation18 + $0x3]]  ;;  %s396_s25 = smov 32   ;;  %vm263_vm4 = vcmask 253952  }
  0x19   :  { %v89_v7 = vadd.s32 8, %v88_v5  ;;  %vm99_vm1 = vcmp.lt.s32.totalorder %v88_v5, 3  ;;  %130 = vmatpush.msra.mxu0 %v113_v11  ;;  %v110_v20 = vld [vmem:[#allocation17 + $0x80] sm:$0xff]  ;;  %v108_v22 = vld [vmem:[%s468_s0 + $0x1] sm:$0x1]  ;;  %v145_v25 = vld [vmem:[#allocation17 + $0x30] sm:$0xff] }
  0x1a   :  { %157 = vmatpush.msra.mxu1 %v152_v4  ;;  %v100_v16 = vsel %vm99_vm1, %v95_v9, %v11_v0  ;;  %v147_v23 = vld [vmem:[#allocation17 + $0x40] sm:$0xff]  ;;  %v146_v24 = vld [vmem:[#allocation17 + $0x38] sm:$0xff]  ;;  %v144_v26 = vld [vmem:[#allocation17 + $0x28] sm:$0xff]  ;;  %s397_s26 = smov 96  }
  0x1b   :  { %vm90_vm2 = vcmp.lt.s32.totalorder %v89_v7, 9  ;;  %131 = vmatpush.msra.mxu0 %v112_v12  ;;  %v143_v27 = vld [vmem:[#allocation17 + $0x20] sm:$0xff]  ;;  %v142_v28 = vld [vmem:[#allocation17 + $0x18] sm:$0xff]  ;;  %v141_v29 = vld [vmem:[#allocation17 + $0x10] sm:$0xff]  ;;  %v179_v35 = vstv %s278_s17 }
  0x1c   :  { %158 = vmatpush.msra.mxu1 %v151_v6  ;;  %v91_v13 = vsel %vm90_vm2, %v86_v8, %v11_v0  ;;  %v140_v30 = vld [vmem:[#allocation17 + $0x8] sm:$0xff]  ;;  %v139_v31 = vld [vmem:[#allocation17] sm:$0xff]  ;;  %v109_v33 = vld [vmem:[%s468_s0 + $0x2] sm:$0x1]  ;;  %v186_v36 = vstv %s279_s18  ;;  %s395_s0 = smov 64  }
  0x1d   :  { %v93_v15 = vsel %vm92_vm0, %v91_v13, %v11_v0  ;;  %132 = vmatpush.msra.mxu0 %v111_v17  ;;  %261 = vst [vmem:[%s474_s6 + $0x1] sm:$0x3] %v394_v34  ;;  %v176_v38 = vstv %s175_s21  ;;  %v200_v51 = vld [vmem:[#allocation17 + $0xc0] sm:$0x1]  ;;  %v229_v0 = vld [vmem:[#allocation17 + $0xb8] sm:$0xff]  ;;  %v228_v1 = vld [vmem:[#allocation17 + $0xb0] sm:$0xff] }
  0x1e   :  { %159 = vmatpush.msra.mxu1 %v150_v10  ;;  %v94_v18 = vrot.slane %v93_v15, 5  ;;  %v193_v39 = vstv %s280_s24  ;;  %248 = vmatpush.msra.mxu2 %v229_v0  ;;  %v227_v2 = vld [vmem:[#allocation17 + $0xa8] sm:$0xff]  ;;  %v226_v3 = vld [vmem:[#allocation17 + $0xa0] sm:$0xff] }
  0x1f   :  { %133 = vmatpush.msra.mxu0 %v110_v20  ;;  %v230_v8 = vld [vmem:[#allocation17 + $0xc1] sm:$0x1]  ;;  %v256_v11 = vld [vmem:[#allocation17 + $0xc2] sm:$0x1] }
  0x20   :  { %160 = vmatpush.msra.mxu1 %v149_v14  ;;  %v103_v21 = vmax.f32 %v100_v16, %v94_v18  ;;  %277 = vmatmul.msk.f32.vlgmr.msra.gmra.mxu0 %vm114_vm3, %v108_v22 }
  0x21   :  { %249 = vmatpush.msra.mxu2 %v228_v1 }
  0x22   :  { %161 = vmatpush.msra.mxu1 %v148_v19  ;;  %107 = vst [vmem:[#allocation19] sm:$0xf] %v103_v21 }
  0x23   :  { %250 = vmatpush.msra.mxu2 %v227_v2 }
  0x24   :  { %162 = vmatpush.msra.mxu1 %v147_v23 }
  0x25   :  { %251 = vmatpush.msra.mxu2 %v226_v3 }
  0x26   :  { %163 = vmatpush.msra.mxu1 %v146_v24 }
  0x28   :  { %164 = vmatpush.msra.mxu1 %v145_v25 }
  0x29   :  { %v138_v32 = vld [vmem:[#allocation19] sm:$0xf] }
  0x2a   :  { %165 = vmatpush.msra.mxu1 %v144_v26 }
  0x2c   :  { %166 = vmatpush.msra.mxu1 %v143_v27 }
  0x2e   :  { %167 = vmatpush.msra.mxu1 %v142_v28 }
  0x30   :  { %168 = vmatpush.msra.mxu1 %v141_v29 }
  0x32   :  { %169 = vmatpush.msra.mxu1 %v140_v30 }
  0x34   :  { %170 = vmatpush.msra.mxu1 %v139_v31 }
  0x35   :  { %171 = vmatmul.f32.vlgmr.msra.gmra.mxu1 %v138_v32 }
  0x9d   :  { %v135_v49 = vpop.f32.mrf.mxu0 }
  0xb2   :  { %v172_v37 = vpop.f32.mrf.mxu1 }
  0xb3   :  { %v180_v40 = vmul.f32 %v179_v35, %v172_v37  ;;  %v187_v41 = vmul.f32 %v186_v36, %v172_v37  ;;  %v177_v42 = vmul.f32 %v176_v38, %v172_v37  ;;  %v194_v44 = vmul.f32 %v193_v39, %v172_v37 }
  0xb5   :  { %v182_v43 = vrot.slane %v180_v40, 1  ;;  %v189_v46 = vrot.slane %v187_v41, 2  ;;  %v196_v47 = vrot.slane %v194_v44, 3 }
  0xb7   :  { %v184_v45 = vadd.f32 %v182_v43, %v177_v42 }
  0xb9   :  { %v191_v48 = vadd.f32 %v189_v46, %v184_v45 }
  0xbb   :  { %v198_v50 = vadd.f32 %v196_v47, %v191_v48 }
  0xbd   :  { %v199_v52 = vadd.f32 %v198_v50, %v135_v49 }
  0xbf   :  { %v201_v53 = vadd.f32 %v200_v51, %v199_v52 }
  0xc1   :  { %292 = vtanh.f32 %v201_v53 }
  0xc7   :  { %v293_v54 = vpop.eup %292 }
  0xc8   :  { %211 = vrot.lane.b32.xlu0 %v293_v54, %s395_s0  ;;  %v203_v55 = vmul.f32 0.5, %v293_v54 }
  0xca   :  { %v204_v56 = vadd.f32 0.5, %v203_v55 }
  0xd0   :  { %206 = vrot.lane.b32.xlu0 %v109_v33, %s396_s25 }
 0x13a   :  { %v212_v57 = vpop.permute.xlu0 %211 }
 0x13b   :  { %v214_v58 = vmul.f32 %v212_v57, %v204_v56 }
 0x13d   :  { %216 = vrot.lane.b32.xlu1 %v214_v58, %s396_s25 }
 0x142   :  { %v207_v59 = vpop.permute.xlu0 %206 }
 0x143   :  { %v209_v60 = vmul.f32 %v207_v59, %v204_v56 }
 0x1af   :  { %v217_v61 = vpop.permute.xlu1 %216 }
 0x1b0   :  { %v219_v62 = vadd.f32 %v217_v61, %v209_v60 }
 0x1b2   :  { %294 = vtanh.f32 %v219_v62 }
 0x1b8   :  { %v295_v63 = vpop.eup %294 }
 0x1b9   :  { %222 = vrot.lane.b32.xlu1 %v295_v63, %s395_s0 }
 0x22b   :  { %v223_v4 = vpop.permute.xlu1 %222 }
 0x22c   :  { %v225_v5 = vmul.f32 %v223_v4, %v204_v56 }
 0x22e   :  { %232 = vrot.lane.b32.xlu2 %v225_v5, %s396_s25 }
 0x236   :  { %266 = vrot.lane.b32.xlu2 %v219_v62, %s397_s26 }
 0x288   :  { %v233_v6 = vpop.permute.xlu2 %232 }
 0x289   :  { %264 = vst.msk [vmem:[%s474_s6 + $0x1] sm:$0x1] %vm263_vm4, %v233_v6  ;;  %281 = vmatmul.msk.f32.vlgmr.msra.gmra.mxu2 %vm114_vm3, %v233_v6 }
 0x290   :  { %v267_v7 = vpop.permute.xlu2 %266 }
 0x291   :  { %269 = vst.msk [vmem:[%s474_s6 + $0x2] sm:$0x1] %vm263_vm4, %v267_v7 }
 0x30c   :  { %v253_v9 = vpop.f32.mrf.mxu2 }
 0x30d   :  { %v254_v10 = vadd.f32 %v253_v9, %v230_v8 }
 0x30f   :  { %296 = vtanh.f32 %v254_v10 }
 0x315   :  { %v297_v12 = vpop.eup %296 }
 0x316   :  { %v258_v13 = vadd.f32 %v297_v12, %v256_v11 }
 0x318   :  { %v259_v14 = vmax.f32 %v258_v13, 0.0 }
 0x31a   :  { %260 = vst [vmem:[%s474_s6] sm:$0x1] %v259_v14 }
 0x31b   :  { %274 = vsyncpa [#allocation13], 1 }
 0x31c   :  { %275 = vsyncpa [#allocation16], 1 }
 0x31d   :  { %276 = vsyncpa [#allocation14], 1 }

</bundles_post_ra>
